<compile_context>
chip_gen: v5e
topology: v5e:2x2
jax: 0.10.0
libtpu: 0.0.40
codegen_flags: <defaults>
</compile_context>

<pallas_src>
import math
from functools import partial

import jax
import jax.numpy as jnp
from jax.experimental import pallas as pl
from jax.experimental.pallas import tpu as pltpu

LOGIT_SCALE = 4.4292        # self.logit_scale (log-space, exp() applied in forward)
EMBED_DIM = 32              # shared image/text embedding dim
TEXT_HIDDEN = 64            # BERT pooler_output hidden size (stand-in)
NUM_CLASSES = 8             # number of classnames / prompts

LANE = 128                  # TPU lane width
SUBLANE = 8                 # TPU sublane width (f32)


def _round_up(x, m):
    return (x + m - 1) // m * m


def _pad_to(x, shape):
    pads = [(0, t - s) for s, t in zip(x.shape, shape)]
    return jnp.pad(x, pads)


def _vmem_spec():
    # Whole-array blocks resident in VMEM (shapes here are tiny, block == full
    # array satisfies the (8,128) rule without materializing lane padding).
    return pl.BlockSpec(memory_space=pltpu.MemorySpace.VMEM)


# -------- text-side precompute (the torch.no_grad() block in __init__) --------
def _text_feature_kernel(pooler_ref, proj_ref, out_ref):
    # pooler: [Kp, H], proj: [H, D]
    #   -> exp(logit_scale) * L2-normalized text features, [Kp, D]
    t = jnp.dot(pooler_ref[...], proj_ref[...], preferred_element_type=jnp.float32)
    sumsq = jnp.sum(t * t, axis=-1, keepdims=True)
    # rsqrt (EUP) instead of sqrt + divide (VALU). The max() guards the
    # zero-padded class rows (their sum of squares is exactly 0); real rows
    # are untouched, padded rows stay exactly 0 after the multiply.
    inv = jax.lax.rsqrt(jnp.maximum(sumsq, 1e-30))
    # Fold exp(logit_scale) into the text features so forward's output path
    # has no extra full-tile multiply.
    out_ref[...] = t * (math.exp(LOGIT_SCALE) * inv)


@jax.jit
def compute_text_features(pooler_output, projection_layer):
    """Init-only precompute.

    Returns [Kp, D] text features, L2-normalized and pre-scaled by
    exp(logit_scale). Only the class/row axis is padded (K -> 128) because it
    becomes the lane axis of the logits; the embed dim stays un-padded.
    """
    K, H = pooler_output.shape
    D = projection_layer.shape[1]
    Kp = _round_up(max(K, SUBLANE), LANE)   # logits lane axis -> 128 (lane-dense store)

    pooler_p = _pad_to(pooler_output.astype(jnp.float32), (Kp, H))
    proj_f32 = projection_layer.astype(jnp.float32)

    return pl.pallas_call(
        _text_feature_kernel,
        out_shape=jax.ShapeDtypeStruct((Kp, D), jnp.float32),
        in_specs=[_vmem_spec(), _vmem_spec()],
        out_specs=_vmem_spec(),
    )(pooler_p, proj_f32)


def prepare_image_encoder_params(w_enc, b_enc):
    """One-time weight prep (hoisted out of the per-call path): cast to f32
    and shape the bias as a [1, D] row. No HBM lane padding."""
    return (jnp.asarray(w_enc, dtype=jnp.float32),
            jnp.asarray(b_enc, dtype=jnp.float32).reshape(1, -1))


# -------- forward: encode -> L2 normalize -> scaled cosine-similarity logits --
def _forward_kernel(x_ref, w_ref, b_ref, txt_ref, logits_ref):
    # x: [Bp, Din], w: [Din, D], b: [1, D],
    # txt: [Kp, D] (already L2-normalized and pre-scaled by exp(logit_scale))
    feats = jnp.dot(x_ref[...], w_ref[...], preferred_element_type=jnp.float32)
    feats = feats + b_ref[...]
    # image_features = image_features / image_features.norm(dim=-1, keepdim=True)
    # Row scaling commutes with the matmul, so the rsqrt is computed off the
    # MXU->MXU critical path and applied to the [Bp, Kp] logits tile instead.
    sumsq = jnp.sum(feats * feats, axis=-1, keepdims=True)
    inv = jax.lax.rsqrt(jnp.maximum(sumsq, 1e-30))   # EUP rsqrt, zero-row guard
    # logits = exp(logit_scale) * image_features @ text_features.t()
    # trans_b via dot_general contraction on the last dims — no XLU transpose.
    logits_raw = jax.lax.dot_general(
        feats, txt_ref[...],
        dimension_numbers=(((1,), (1,)), ((), ())),
        preferred_element_type=jnp.float32,
    )
    logits_ref[...] = logits_raw * inv


@partial(jax.jit, static_argnames=("num_classes",))
def pmcclip_zs_forward(image, w_enc_f32, b_enc_row, text_features_padded, num_classes):
    B = image.shape[0]
    x_flat = image.reshape(B, -1).astype(jnp.float32)   # NCHW -> [B, C*H*W]
    Din = w_enc_f32.shape[0]
    Kp = text_features_padded.shape[0]

    Bp = _round_up(B, SUBLANE)                           # tiny sublane pad (2 -> 8)
    x_p = _pad_to(x_flat, (Bp, Din))

    logits_p = pl.pallas_call(
        _forward_kernel,
        out_shape=jax.ShapeDtypeStruct((Bp, Kp), jnp.float32),
        in_specs=[_vmem_spec(), _vmem_spec(), _vmem_spec(), _vmem_spec()],
        out_specs=_vmem_spec(),
    )(x_p, w_enc_f32, b_enc_row, text_features_padded)

    # Slice the lane-dense padded result back to the logical [B, K]
    # (fused into the jitted call, not a separate dispatch).
    return logits_p[:B, :num_classes]


if __name__ == "__main__":
    key = jax.random.PRNGKey(0)
    k_img, k_w, k_b, k_pool, k_proj = jax.random.split(key, 5)

    B, C, H, W = 2, 4, 16, 16
    DIN = C * H * W

    # Forward input (NCHW, as PyTorch would pass it).
    image = jax.random.normal(k_img, (B, C, H, W), dtype=jnp.float32)

    # Deterministic synthetic parameters (stand-in linear image encoder and
    # BERT pooler / projection, since the real encoders are external modules).
    w_enc = jax.random.normal(k_w, (DIN, EMBED_DIM), dtype=jnp.float32) * 0.02
    b_enc = jax.random.normal(k_b, (EMBED_DIM,), dtype=jnp.float32) * 0.02
    pooler_output = jax.random.normal(
        k_pool, (NUM_CLASSES, TEXT_HIDDEN), dtype=jnp.float32
    )
    projection_layer = jax.random.normal(
        k_proj, (TEXT_HIDDEN, EMBED_DIM), dtype=jnp.float32
    ) * 0.05

    # __init__-time precompute (Pallas kernel): normalized + pre-scaled +
    # class-axis padded; plus one-time image-encoder weight prep.
    text_features = compute_text_features(pooler_output, projection_layer)
    w_enc_f32, b_enc_row = prepare_image_encoder_params(w_enc, b_enc)

    # forward (jitted wrapper around the Pallas kernel).
    logits = pmcclip_zs_forward(image, w_enc_f32, b_enc_row, text_features, NUM_CLASSES)
    logits = jax.block_until_ready(logits)

    # Pure-JAX reference check (unpadded, matches the PyTorch module math).
    feats_ref = image.reshape(B, -1) @ w_enc + b_enc
    feats_ref = feats_ref / jnp.linalg.norm(feats_ref, axis=-1, keepdims=True)
    txt_ref = pooler_output @ projection_layer
    txt_ref = txt_ref / jnp.linalg.norm(txt_ref, axis=-1, keepdims=True)
    logits_ref = math.exp(LOGIT_SCALE) * feats_ref @ txt_ref.T

    assert logits.shape == (B, NUM_CLASSES)
    assert jnp.allclose(logits, logits_ref, rtol=1e-4, atol=1e-3), "mismatch vs reference"

    print("KERNEL_OK")
</pallas_src>

<mosaic_0001>
module attributes {stable_mosaic.version = 11 : i64} {
  func.func @_text_feature_kernel(%arg0: memref<128x64xf32, #tpu.memory_space<vmem>>, %arg1: memref<64x32xf32, #tpu.memory_space<vmem>>, %arg2: memref<128x32xf32, #tpu.memory_space<vmem>>) attributes {dimension_semantics = [], scalar_prefetch = 0 : i64, scratch_operands = 0 : i64, tpu.core_type = #tpu.core_type<tc>} {
    %c0 = arith.constant 0 : index
    %c0_0 = arith.constant 0 : index
    %0 = vector.load %arg0[%c0, %c0_0] : memref<128x64xf32, #tpu.memory_space<vmem>>, vector<128x64xf32>
    %c0_1 = arith.constant 0 : index
    %c0_2 = arith.constant 0 : index
    %1 = vector.load %arg1[%c0_1, %c0_2] : memref<64x32xf32, #tpu.memory_space<vmem>>, vector<64x32xf32>
    %cst = arith.constant dense<0.000000e+00> : vector<128x32xf32>
    %2 = tpu.matmul %0, %1, %cst {dimension_numbers = #tpu.dot_dimension_numbers<[1], [0], [0], [1], [0, 0, 1, 1], [], []>} : vector<128x64xf32>, vector<64x32xf32>, vector<128x32xf32> -> vector<128x32xf32>
    %3 = arith.mulf %2, %2 : vector<128x32xf32>
    %cst_3 = arith.constant dense<0.000000e+00> : vector<128xf32>
    %4 = vector.multi_reduction <add>, %3, %cst_3 [1] : vector<128x32xf32> to vector<128xf32>
    %5 = vector.shape_cast %4 : vector<128xf32> to vector<128x1xf32>
    %cst_4 = arith.constant 1.000000e-30 : f32
    %6 = vector.broadcast %cst_4 : f32 to vector<128x1xf32>
    %7 = arith.maximumf %5, %6 : vector<128x1xf32>
    %8 = math.rsqrt %7 : vector<128x1xf32>
    %cst_5 = arith.constant 83.864296 : f32
    %9 = vector.broadcast %cst_5 : f32 to vector<128x1xf32>
    %10 = arith.mulf %9, %8 : vector<128x1xf32>
    %11 = vector.broadcast %10 : vector<128x1xf32> to vector<128x32xf32>
    %12 = arith.mulf %2, %11 : vector<128x32xf32>
    %c0_6 = arith.constant 0 : index
    %c0_7 = arith.constant 0 : index
    %13 = vector.load %arg2[%c0_6, %c0_7] : memref<128x32xf32, #tpu.memory_space<vmem>>, vector<128x32xf32>
    tpu.vector_store %arg2[%c0_6, %c0_7], %12 {strides = array<i32>} : memref<128x32xf32, #tpu.memory_space<vmem>>, vector<128x32xf32>,
    return
  }
}

</mosaic_0001>

<bundles_post_ra>
// kernel: compute_text_features.1
= control target key start
LH: loop header
LB: loop body
LE: loop exit
PB: predicated region body
PF: predicated region fallthrough
CT: control target
= control target key end

     0   :  { %vm35_vm0 = vcmask 523264   ;;  %vm165_vm1 = vcmask 261120   ;;  %s890_s1 = inlined_call_operand.vmem [shape: f32[64,32], index: 1, kind: input, shape index: {}]   ;;  %s891_s0 = inlined_call_operand.vmem [shape: f32[128,64], index: 0, kind: input, shape index: {}]   ;;  %s892_s2 = inlined_call_operand.vmem [shape: f32[128,32], index: 2, kind: output, shape index: {}]  }
   0x1   :  { %v34_v0 = vld [vmem:[%s890_s1 + $0x38] sm:$0xff]  ;;  %v33_v1 = vld [vmem:[%s890_s1 + $0x30] sm:$0xff]  ;;  %v32_v2 = vld [vmem:[%s890_s1 + $0x28] sm:$0xff] }
   0x2   :  { %92 = vmatpush.msra.mxu0 %v34_v0  ;;  %458 = vmatpush.msra.mxu1 %v34_v0  ;;  %v31_v3 = vld [vmem:[%s890_s1 + $0x20] sm:$0xff]  ;;  %v30_v4 = vld [vmem:[%s890_s1 + $0x18] sm:$0xff]  ;;  %v29_v5 = vld [vmem:[%s890_s1 + $0x10] sm:$0xff] }
   0x3   :  { %459 = vmatpush.msra.mxu2 %v34_v0  ;;  %460 = vmatpush.msra.mxu3 %v34_v0  ;;  %v28_v6 = vld [vmem:[%s890_s1 + $0x8] sm:$0xff]  ;;  %v27_v7 = vld [vmem:[%s890_s1] sm:$0xff]  ;;  %v13_v16 = vld [vmem:[%s891_s0 + $0x10] sm:$0xff] }
   0x4   :  { %93 = vmatpush.msra.mxu0 %v33_v1  ;;  %461 = vmatpush.msra.mxu1 %v33_v1  ;;  %v11_v8 = vld [vmem:[%s891_s0] sm:$0xff]  ;;  %v12_v12 = vld [vmem:[%s891_s0 + $0x8] sm:$0xff]  ;;  %v21_v17 = vld [vmem:[%s891_s0 + $0x50] sm:$0xff] }
   0x5   :  { %462 = vmatpush.msra.mxu2 %v33_v1  ;;  %463 = vmatpush.msra.mxu3 %v33_v1  ;;  %v15_v9 = vld [vmem:[%s891_s0 + $0x20] sm:$0xff]  ;;  %v20_v13 = vld [vmem:[%s891_s0 + $0x48] sm:$0xff]  ;;  %v17_v18 = vld [vmem:[%s891_s0 + $0x30] sm:$0xff] }
   0x6   :  { %94 = vmatpush.msra.mxu0 %v32_v2  ;;  %464 = vmatpush.msra.mxu1 %v32_v2  ;;  %v19_v10 = vld [vmem:[%s891_s0 + $0x40] sm:$0xff]  ;;  %v16_v14 = vld [vmem:[%s891_s0 + $0x28] sm:$0xff]  ;;  %v25_v19 = vld [vmem:[%s891_s0 + $0x70] sm:$0xff] }
   0x7   :  { %465 = vmatpush.msra.mxu2 %v32_v2  ;;  %466 = vmatpush.msra.mxu3 %v32_v2  ;;  %v23_v11 = vld [vmem:[%s891_s0 + $0x60] sm:$0xff]  ;;  %v24_v15 = vld [vmem:[%s891_s0 + $0x68] sm:$0xff]  ;;  %v14_v20 = vld [vmem:[%s891_s0 + $0x18] sm:$0xff] }
   0x8   :  { %95 = vmatpush.msra.mxu0 %v31_v3  ;;  %467 = vmatpush.msra.mxu1 %v31_v3  ;;  %v22_v21 = vld [vmem:[%s891_s0 + $0x58] sm:$0xff] }
   0x9   :  { %468 = vmatpush.msra.mxu2 %v31_v3  ;;  %469 = vmatpush.msra.mxu3 %v31_v3  ;;  %v18_v22 = vld [vmem:[%s891_s0 + $0x38] sm:$0xff] }
   0xa   :  { %96 = vmatpush.msra.mxu0 %v30_v4  ;;  %470 = vmatpush.msra.mxu1 %v30_v4  ;;  %v26_v23 = vld [vmem:[%s891_s0 + $0x78] sm:$0xff] }
   0xb   :  { %471 = vmatpush.msra.mxu2 %v30_v4  ;;  %472 = vmatpush.msra.mxu3 %v30_v4 }
   0xc   :  { %97 = vmatpush.msra.mxu0 %v29_v5  ;;  %473 = vmatpush.msra.mxu1 %v29_v5 }
   0xd   :  { %474 = vmatpush.msra.mxu2 %v29_v5  ;;  %475 = vmatpush.msra.mxu3 %v29_v5 }
   0xe   :  { %98 = vmatpush.msra.mxu0 %v28_v6  ;;  %476 = vmatpush.msra.mxu1 %v28_v6 }
   0xf   :  { %477 = vmatpush.msra.mxu2 %v28_v6  ;;  %478 = vmatpush.msra.mxu3 %v28_v6 }
  0x10   :  { %99 = vmatpush.msra.mxu0 %v27_v7  ;;  %479 = vmatpush.msra.mxu1 %v27_v7 }
  0x11   :  { %480 = vmatpush.msra.mxu2 %v27_v7  ;;  %442 = vmatmul.msk.f32.vlgmr.msra.gmra.mxu0 %vm35_vm0, %v11_v8 }
  0x12   :  { %446 = vmatmul.msk.f32.vlgmr.msra.gmra.mxu1 %vm35_vm0, %v15_v9  ;;  %450 = vmatmul.msk.f32.vlgmr.msra.gmra.mxu2 %vm35_vm0, %v19_v10 }
  0x13   :  { %481 = vmatpush.msra.mxu3 %v27_v7 }
  0x14   :  { %454 = vmatmul.msk.f32.vlgmr.msra.gmra.mxu3 %vm35_vm0, %v23_v11 }
  0x19   :  { %443 = vmatmul.msk.f32.gmra.mxu0 %vm35_vm0, %v12_v12 }
  0x1a   :  { %451 = vmatmul.msk.f32.gmra.mxu2 %vm35_vm0, %v20_v13  ;;  %447 = vmatmul.msk.f32.gmra.mxu1 %vm35_vm0, %v16_v14 }
  0x1c   :  { %455 = vmatmul.msk.f32.gmra.mxu3 %vm35_vm0, %v24_v15 }
  0x21   :  { %444 = vmatmul.msk.f32.gmra.mxu0 %vm35_vm0, %v13_v16 }
  0x22   :  { %452 = vmatmul.msk.f32.gmra.mxu2 %vm35_vm0, %v21_v17  ;;  %448 = vmatmul.msk.f32.gmra.mxu1 %vm35_vm0, %v17_v18 }
  0x24   :  { %456 = vmatmul.msk.f32.gmra.mxu3 %vm35_vm0, %v25_v19 }
  0x29   :  { %445 = vmatmul.msk.f32.gmra.mxu0 %vm35_vm0, %v14_v20 }
  0x2a   :  { %453 = vmatmul.msk.f32.gmra.mxu2 %vm35_vm0, %v22_v21  ;;  %449 = vmatmul.msk.f32.gmra.mxu1 %vm35_vm0, %v18_v22 }
  0x2c   :  { %457 = vmatmul.msk.f32.gmra.mxu3 %vm35_vm0, %v26_v23 }
  0x8e   :  { %v617_v24 = vpop.f32.mrf.mxu0 }
  0x8f   :  { %v619_v25 = vpop.f32.mrf.mxu1  ;;  %v149_v26 = vmul.f32 %v617_v24, %v617_v24 }
  0x90   :  { %v153_v27 = vmul.f32 %v619_v25, %v619_v25 }
  0x91   :  { %v166_v28 = vsel %vm165_vm1, %v149_v26, 0.0 }
  0x92   :  { %v178_v29 = vsel %vm165_vm1, %v153_v27, 0.0  ;;  %167 = vadd.xlane.f32.xlu0 %v166_v28 }
  0x93   :  { %179 = vadd.xlane.f32.xlu2 %v178_v29 }
  0x95   :  { %v627_v30 = vpop.f32.mrf.mxu2 }
  0x96   :  { %v157_v31 = vmul.f32 %v627_v30, %v627_v30  ;;  %v631_v32 = vpop.f32.mrf.mxu0 }
  0x97   :  { %v633_v33 = vpop.f32.mrf.mxu3  ;;  %v638_v36 = vpop.f32.mrf.mxu1  ;;  %v150_v40 = vmul.f32 %v631_v32, %v631_v32 }
  0x98   :  { %v161_v34 = vmul.f32 %v633_v33, %v633_v33  ;;  %v190_v35 = vsel %vm165_vm1, %v157_v31, 0.0  ;;  %v154_v38 = vmul.f32 %v638_v36, %v638_v36 }
  0x99   :  { %v169_v46 = vsel %vm165_vm1, %v150_v40, 0.0 }
  0x9a   :  { %v202_v37 = vsel %vm165_vm1, %v161_v34, 0.0  ;;  %v181_v44 = vsel %vm165_vm1, %v154_v38, 0.0 }
  0x9b   :  { %191 = vadd.xlane.f32.xlu2 %v190_v35  ;;  %203 = vadd.xlane.f32.xlu0 %v202_v37 }
  0x9d   :  { %v643_v39 = vpop.f32.mrf.mxu2 }
  0x9e   :  { %v647_v41 = vpop.f32.mrf.mxu0  ;;  %v158_v48 = vmul.f32 %v643_v39, %v643_v39 }
  0x9f   :  { %v151_v42 = vmul.f32 %v647_v41, %v647_v41  ;;  %v651_v43 = vpop.f32.mrf.mxu3  ;;  %v662_v50 = vpop.f32.mrf.mxu1 }
  0xa0   :  { %v193_v54 = vsel %vm165_vm1, %v158_v48, 0.0  ;;  %v155_v56 = vmul.f32 %v662_v50, %v662_v50  ;;  %v162_v6 = vmul.f32 %v651_v43, %v651_v43 }
  0xa1   :  { %v172_v45 = vsel %vm165_vm1, %v151_v42, 0.0 }
  0xa2   :  { %173 = vadd.xlane.f32.xlu1 %v172_v45  ;;  %v184_v61 = vsel %vm165_vm1, %v155_v56, 0.0  ;;  %v205_v7 = vsel %vm165_vm1, %v162_v6, 0.0 }
  0xa3   :  { %182 = vadd.xlane.f32.xlu2 %v181_v44  ;;  %170 = vadd.xlane.f32.xlu0 %v169_v46 }
  0xa5   :  { %v656_v47 = vpop.f32.mrf.mxu2 }
  0xa6   :  { %v159_v49 = vmul.f32 %v656_v47, %v656_v47  ;;  %v667_v53 = vpop.f32.mrf.mxu0 }
  0xa7   :  { %v664_v51 = vpop.f32.mrf.mxu3  ;;  %v152_v55 = vmul.f32 %v667_v53, %v667_v53  ;;  %v681_v62 = vpop.f32.mrf.mxu1 }
  0xa8   :  { %v196_v52 = vsel %vm165_vm1, %v159_v49, 0.0  ;;  %v163_v0 = vmul.f32 %v664_v51, %v664_v51  ;;  %v156_v1 = vmul.f32 %v681_v62, %v681_v62 }
  0xa9   :  { %v175_v59 = vsel %vm165_vm1, %v152_v55, 0.0 }
  0xaa   :  { %197 = vadd.xlane.f32.xlu1 %v196_v52  ;;  %v208_v3 = vsel %vm165_vm1, %v163_v0, 0.0  ;;  %v187_v4 = vsel %vm165_vm1, %v156_v1, 0.0 }
  0xab   :  { %194 = vadd.xlane.f32.xlu0 %v193_v54 }
  0xad   :  { %v674_v57 = vpop.f32.mrf.mxu2 }
  0xae   :  { %v160_v58 = vmul.f32 %v674_v57, %v674_v57 }
  0xaf   :  { %v683_v63 = vpop.f32.mrf.mxu3 }
  0xb0   :  { %v199_v60 = vsel %vm165_vm1, %v160_v58, 0.0  ;;  %v164_v2 = vmul.f32 %v683_v63, %v683_v63 }
  0xb1   :  { %200 = vadd.xlane.f32.xlu2 %v199_v60 }
  0xb2   :  { %176 = vadd.xlane.f32.xlu1 %v175_v59  ;;  %v211_v5 = vsel %vm165_vm1, %v164_v2, 0.0 }
  0xb3   :  { %185 = vadd.xlane.f32.xlu0 %v184_v61 }
  0xb9   :  { %209 = vadd.xlane.f32.xlu2 %v208_v3 }
  0xba   :  { %188 = vadd.xlane.f32.xlu1 %v187_v4 }
  0xbb   :  { %212 = vadd.xlane.f32.xlu0 %v211_v5 }
  0xc2   :  { %206 = vadd.xlane.f32.xlu1 %v205_v7 }
 0x105   :  { %v168_v8 = vpop.xlane.xlu0 %167 }
 0x106   :  { %v180_v9 = vpop.xlane.xlu2 %179  ;;  %v214_v10 = vmax.f32 %v168_v8, 1e-30 }
 0x107   :  { %v218_v11 = vmax.f32 %v180_v9, 1e-30 }
 0x108   :  { %482 = vrsqrt.f32 %v214_v10  ;;  %vm236_vm6 = vweird.f32 %v214_v10 }
 0x109   :  { %484 = vrsqrt.f32 %v218_v11  ;;  %vm276_vm2 = vweird.f32 %v218_v11 }
 0x10e   :  { %v483_v12 = vpop.eup %482  ;;  %v192_v13 = vpop.xlane.xlu2 %191 }
 0x10f   :  { %v204_v14 = vpop.xlane.xlu0 %203  ;;  %v485_v15 = vpop.eup %484  ;;  %v231_v16 = vmul.f32 %v483_v12, %v214_v10  ;;  %v222_v17 = vmax.f32 %v192_v13, 1e-30  ;;  %vm237_vm4 = vweird.f32 %v483_v12 }
 0x110   :  { %v697_v18 = vmax.f32 %v204_v14, 1e-30  ;;  %v271_v19 = vmul.f32 %v485_v15, %v218_v11  ;;  %vm277_vm3 = vweird.f32 %v485_v15  ;;  %vm238_vm7 = vmor %vm236_vm6, %vm237_vm4 }
 0x111   :  { %v232_v20 = vmul.f32 %v483_v12, %v231_v16  ;;  %486 = vrsqrt.f32 %v222_v17  ;;  %vm702_vm5 = vmor %vm276_vm2, %vm277_vm3  ;;  %vm316_vm11 = vweird.f32 %v222_v17 }
 0x112   :  { %v272_v21 = vmul.f32 %v485_v15, %v271_v19  ;;  %488 = vrsqrt.f32 %v697_v18  ;;  %vm356_vm9 = vweird.f32 %v697_v18 }
 0x113   :  { %v233_v22 = vmul.f32 0.5, %v232_v20 }
 0x114   :  { %v273_v23 = vmul.f32 0.5, %v272_v21 }
 0x115   :  { %v234_v26 = vsub.f32 1.5, %v233_v22  ;;  %v174_v27 = vpop.xlane.xlu1 %173 }
 0x116   :  { %v274_v28 = vsub.f32 1.5, %v273_v23  ;;  %v183_v29 = vpop.xlane.xlu2 %182  ;;  %v700_v34 = vmax.f32 %v174_v27, 1e-30 }
 0x117   :  { %v171_v31 = vpop.xlane.xlu0 %170  ;;  %v487_v35 = vpop.eup %486  ;;  %v235_v38 = vmul.f32 %v483_v12, %v234_v26  ;;  %v706_v40 = vmax.f32 %v183_v29, 1e-30 }
 0x118   :  { %v708_v42 = vmax.f32 %v171_v31, 1e-30  ;;  %v489_v44 = vpop.eup %488  ;;  %v275_v45 = vmul.f32 %v485_v15, %v274_v28  ;;  %v311_v46 = vmul.f32 %v487_v35, %v222_v17  ;;  %490 = vrsqrt.f32 %v700_v34 }
 0x119   :  { %v239_v48 = vsel %vm238_vm7, %v483_v12, %v235_v38  ;;  %v351_v49 = vmul.f32 %v489_v44, %v697_v18  ;;  %492 = vrsqrt.f32 %v706_v40  ;;  %vm317_vm8 = vweird.f32 %v487_v35 }
 0x11a   :  { %v279_v52 = vsel %vm702_vm5, %v485_v15, %v275_v45  ;;  %v390_v54 = vmul.f32 83.864296, %v239_v48  ;;  %v312_v55 = vmul.f32 %v487_v35, %v311_v46  ;;  %494 = vrsqrt.f32 %v708_v42  ;;  %vm318_vm12 = vmor %vm316_vm11, %vm317_vm8 }
 0x11b   :  { %v394_v56 = vmul.f32 83.864296, %v279_v52  ;;  %v352_v58 = vmul.f32 %v489_v44, %v351_v49  ;;  %vm357_vm10 = vweird.f32 %v489_v44  ;;  %vm286_vm14 = vweird.f32 %v706_v40 }
 0x11c   :  { %v406_v59 = vmul.f32 %v390_v54, %v617_v24  ;;  %v313_v60 = vmul.f32 0.5, %v312_v55  ;;  %vm358_vm13 = vmor %vm356_vm9, %vm357_vm10  ;;  %vm256_vm15 = vweird.f32 %v700_v34  ;;  %vm246_vm6 = vweird.f32 %v708_v42 }
 0x11d   :  { %v410_v61 = vmul.f32 %v394_v56, %v619_v25  ;;  %v353_v0 = vmul.f32 0.5, %v352_v58  ;;  %v198_v1 = vpop.xlane.xlu1 %197 }
 0x11e   :  { %v718_v2 = vpop.eup %490  ;;  %422 = vst.msk [vmem:[%s892_s2] sm:$0xff] %vm165_vm1, %v406_v59  ;;  %v314_v3 = vsub.f32 1.5, %v313_v60  ;;  %v725_v5 = vmax.f32 %v198_v1, 1e-30 }
 0x11f   :  { %v195_v4 = vpop.xlane.xlu0 %194  ;;  %v493_v24 = vpop.eup %492  ;;  %426 = vst.msk [vmem:[%s892_s2 + $0x20] sm:$0xff] %vm165_vm1, %v410_v61  ;;  %v354_v25 = vsub.f32 1.5, %v353_v0  ;;  %v251_v6 = vmul.f32 %v718_v2, %v700_v34  ;;  %vm257_vm0 = vweird.f32 %v718_v2 }
 0x120   :  { %v733_v7 = vmax.f32 %v195_v4, 1e-30  ;;  %v315_v8 = vmul.f32 %v487_v35, %v314_v3  ;;  %v281_v9 = vmul.f32 %v493_v24, %v706_v40  ;;  %496 = vrsqrt.f32 %v725_v5  ;;  %v495_v10 = vpop.eup %494  ;;  %vm258_vm4 = vmor %vm256_vm15, %vm257_vm0 }
 0x121   :  { %v355_v11 = vmul.f32 %v489_v44, %v354_v25  ;;  %v252_v12 = vmul.f32 %v718_v2, %v251_v6  ;;  %v241_v15 = vmul.f32 %v495_v10, %v708_v42  ;;  %vm287_vm2 = vweird.f32 %v493_v24 }
 0x122   :  { %498 = vrsqrt.f32 %v733_v7  ;;  %v319_v13 = vsel %vm318_vm12, %v487_v35, %v315_v8  ;;  %v282_v14 = vmul.f32 %v493_v24, %v281_v9  ;;  %vm247_vm3 = vweird.f32 %v495_v10  ;;  %vm288_vm5 = vmor %vm286_vm14, %vm287_vm2 }
 0x123   :  { %v398_v16 = vmul.f32 83.864296, %v319_v13  ;;  %v359_v17 = vsel %vm358_vm13, %v489_v44, %v355_v11  ;;  %v253_v19 = vmul.f32 0.5, %v252_v12  ;;  %v242_v22 = vmul.f32 %v495_v10, %v241_v15  ;;  %vm248_vm7 = vmor %vm246_vm6, %vm247_vm3 }
 0x124   :  { %v402_v20 = vmul.f32 83.864296, %v359_v17  ;;  %v283_v21 = vmul.f32 0.5, %v282_v14  ;;  %v201_v23 = vpop.xlane.xlu2 %200  ;;  %vm326_vm8 = vweird.f32 %v733_v7  ;;  %vm336_vm11 = vweird.f32 %v725_v5 }
 0x125   :  { %v414_v26 = vmul.f32 %v398_v16, %v627_v30  ;;  %v254_v27 = vsub.f32 1.5, %v253_v19  ;;  %v747_v18 = vmax.f32 %v201_v23, 1e-30  ;;  %v177_v28 = vpop.xlane.xlu1 %176  ;;  %v243_v37 = vmul.f32 0.5, %v242_v22 }
 0x126   :  { %v749_v29 = vpop.eup %496  ;;  %v418_v31 = vmul.f32 %v402_v20, %v633_v33  ;;  %v284_v35 = vsub.f32 1.5, %v283_v21  ;;  %v772_v49 = vmax.f32 %v177_v28, 1e-30 }
 0x127   :  { %v186_v38 = vpop.xlane.xlu0 %185  ;;  %430 = vst.msk [vmem:[%s892_s2 + $0x40] sm:$0xff] %vm165_vm1, %v414_v26  ;;  %v255_v30 = vmul.f32 %v718_v2, %v254_v27  ;;  %v331_v45 = vmul.f32 %v749_v29, %v725_v5  ;;  %500 = vrsqrt.f32 %v747_v18  ;;  %v244_v46 = vsub.f32 1.5, %v243_v37 }
 0x128   :  { %v752_v44 = vpop.eup %498  ;;  %434 = vst.msk [vmem:[%s892_s2 + $0x60] sm:$0xff] %vm165_vm1, %v418_v31  ;;  %v285_v33 = vmul.f32 %v493_v24, %v284_v35  ;;  %v780_v55 = vmax.f32 %v186_v38, 1e-30  ;;  %vm337_vm9 = vweird.f32 %v749_v29  ;;  %vm346_vm14 = vweird.f32 %v747_v18 }
 0x129   :  { %v321_v48 = vmul.f32 %v752_v44, %v733_v7  ;;  %v259_v52 = vsel %vm258_vm4, %v718_v2, %v255_v30  ;;  %v332_v54 = vmul.f32 %v749_v29, %v331_v45  ;;  %v245_v34 = vmul.f32 %v495_v10, %v244_v46  ;;  %vm338_vm12 = vmor %vm336_vm11, %vm337_vm9 }
 0x12a   :  { %v289_v56 = vsel %vm288_vm5, %v493_v24, %v285_v33  ;;  %v392_v58 = vmul.f32 83.864296, %v259_v52  ;;  %502 = vrsqrt.f32 %v780_v55  ;;  %vm327_vm10 = vweird.f32 %v752_v44 }
 0x12b   :  { %v322_v59 = vmul.f32 %v752_v44, %v321_v48  ;;  %v395_v60 = vmul.f32 83.864296, %v289_v56  ;;  %v333_v40 = vmul.f32 0.5, %v332_v54  ;;  %v249_v42 = vsel %vm248_vm7, %v495_v10, %v245_v34  ;;  %vm328_vm13 = vmor %vm326_vm8, %vm327_vm10 }
 0x12c   :  { %v408_v61 = vmul.f32 %v392_v58, %v647_v41  ;;  %504 = vrsqrt.f32 %v772_v49  ;;  %v210_v1 = vpop.xlane.xlu2 %209  ;;  %v391_v4 = vmul.f32 83.864296, %v249_v42  ;;  %vm296_vm4 = vweird.f32 %v780_v55 }
 0x12d   :  { %v323_v0 = vmul.f32 0.5, %v322_v59  ;;  %v501_v2 = vpop.eup %500  ;;  %v411_v3 = vmul.f32 %v395_v60, %v638_v36  ;;  %v334_v24 = vsub.f32 1.5, %v333_v40  ;;  %v189_v25 = vpop.xlane.xlu1 %188  ;;  %v796_v8 = vmax.f32 %v210_v1, 1e-30 }
 0x12e   :  { %424 = vst.msk [vmem:[%s892_s2 + $0x10] sm:$0xff] %vm165_vm1, %v408_v61  ;;  %v341_v41 = vmul.f32 %v501_v2, %v747_v18  ;;  %v407_v36 = vmul.f32 %v391_v4, %v631_v32  ;;  %v809_v14 = vmax.f32 %v189_v25, 1e-30  ;;  %vm347_vm15 = vweird.f32 %v501_v2 }
 0x12f   :  { %v324_v6 = vsub.f32 1.5, %v323_v0  ;;  %v213_v9 = vpop.xlane.xlu0 %212  ;;  %427 = vst.msk [vmem:[%s892_s2 + $0x28] sm:$0xff] %vm165_vm1, %v411_v3  ;;  %v335_v10 = vmul.f32 %v749_v29, %v334_v24  ;;  %506 = vrsqrt.f32 %v796_v8  ;;  %vm348_vm0 = vmor %vm346_vm14, %vm347_vm15  ;;  %vm266_vm5 = vweird.f32 %v772_v49 }
 0x130   :  { %v805_v11 = vmax.f32 %v213_v9, 1e-30  ;;  %v342_v13 = vmul.f32 %v501_v2, %v341_v41  ;;  %v503_v15 = vpop.eup %502  ;;  %423 = vst.msk [vmem:[%s892_s2 + $0x8] sm:$0xff] %vm165_vm1, %v407_v36  ;;  %vm376_vm11 = vweird.f32 %v796_v8  ;;  %vm306_vm15 = vweird.f32 %v809_v14 }
 0x131   :  { %v325_v12 = vmul.f32 %v752_v44, %v324_v6  ;;  %v339_v32 = vsel %vm338_vm12, %v749_v29, %v335_v10  ;;  %v291_v20 = vmul.f32 %v503_v15, %v780_v55  ;;  %vm297_vm2 = vweird.f32 %v503_v15 }
 0x132   :  { %508 = vrsqrt.f32 %v805_v11  ;;  %v505_v5 = vpop.eup %504  ;;  %v400_v17 = vmul.f32 83.864296, %v339_v32  ;;  %v343_v19 = vmul.f32 0.5, %v342_v13  ;;  %vm298_vm6 = vmor %vm296_vm4, %vm297_vm2  ;;  %vm386_vm9 = vweird.f32 %v805_v11 }
 0x133   :  { %v329_v16 = vsel %vm328_vm13, %v752_v44, %v325_v12  ;;  %v261_v22 = vmul.f32 %v505_v5, %v772_v49  ;;  %v292_v26 = vmul.f32 %v503_v15, %v291_v20  ;;  %510 = vrsqrt.f32 %v809_v14 }
 0x134   :  { %v399_v21 = vmul.f32 83.864296, %v329_v16  ;;  %v416_v7 = vmul.f32 %v400_v17, %v656_v47  ;;  %v344_v23 = vsub.f32 1.5, %v343_v19  ;;  %vm267_vm3 = vweird.f32 %v505_v5 }
 0x135   :  { %v262_v28 = vmul.f32 %v505_v5, %v261_v22  ;;  %v207_v29 = vpop.xlane.xlu1 %206  ;;  %v507_v31 = vpop.eup %506  ;;  %v293_v37 = vmul.f32 0.5, %v292_v26  ;;  %vm268_vm7 = vmor %vm266_vm5, %vm267_vm3 }
 0x136   :  { %v415_v27 = vmul.f32 %v399_v21, %v643_v39  ;;  %432 = vst.msk [vmem:[%s892_s2 + $0x50] sm:$0xff] %vm165_vm1, %v416_v7  ;;  %v345_v35 = vmul.f32 %v501_v2, %v344_v23  ;;  %v832_v38 = vmax.f32 %v207_v29, 1e-30  ;;  %v371_v47 = vmul.f32 %v507_v31, %v796_v8 }
 0x137   :  { %v263_v39 = vmul.f32 0.5, %v262_v28  ;;  %v294_v45 = vsub.f32 1.5, %v293_v37  ;;  %vm377_vm8 = vweird.f32 %v507_v31 }
 0x138   :  { %v509_v44 = vpop.eup %508  ;;  %431 = vst.msk [vmem:[%s892_s2 + $0x48] sm:$0xff] %vm165_vm1, %v415_v27  ;;  %v349_v30 = vsel %vm348_vm0, %v501_v2, %v345_v35  ;;  %v372_v52 = vmul.f32 %v507_v31, %v371_v47  ;;  %512 = vrsqrt.f32 %v832_v38  ;;  %vm378_vm12 = vmor %vm376_vm11, %vm377_vm8  ;;  %vm366_vm3 = vweird.f32 %v832_v38 }
 0x139   :  { %v381_v33 = vmul.f32 %v509_v44, %v805_v11  ;;  %v401_v46 = vmul.f32 83.864296, %v349_v30  ;;  %v264_v48 = vsub.f32 1.5, %v263_v39  ;;  %v511_v54 = vpop.eup %510  ;;  %v295_v56 = vmul.f32 %v503_v15, %v294_v45 }
 0x13a   :  { %v373_v59 = vmul.f32 0.5, %v372_v52  ;;  %v301_v60 = vmul.f32 %v511_v54, %v809_v14  ;;  %vm387_vm10 = vweird.f32 %v509_v44  ;;  %vm307_vm14 = vweird.f32 %v511_v54 }
 0x13b   :  { %v382_v18 = vmul.f32 %v509_v44, %v381_v33  ;;  %v417_v34 = vmul.f32 %v401_v46, %v674_v57  ;;  %v265_v58 = vmul.f32 %v505_v5, %v264_v48  ;;  %v299_v40 = vsel %vm298_vm6, %v503_v15, %v295_v56  ;;  %vm388_vm13 = vmor %vm386_vm9, %vm387_vm10 }
 0x13c   :  { %v396_v49 = vmul.f32 83.864296, %v299_v40  ;;  %v374_v61 = vsub.f32 1.5, %v373_v59  ;;  %v302_v57 = vmul.f32 %v511_v54, %v301_v60  ;;  %vm308_vm0 = vmor %vm306_vm15, %vm307_vm14 }
 0x13d   :  { %v383_v42 = vmul.f32 0.5, %v382_v18  ;;  %433 = vst.msk [vmem:[%s892_s2 + $0x58] sm:$0xff] %vm165_vm1, %v417_v34  ;;  %v269_v55 = vsel %vm268_vm7, %v505_v5, %v265_v58 }
 0x13e   :  { %v393_v0 = vmul.f32 83.864296, %v269_v55  ;;  %v513_v2 = vpop.eup %512  ;;  %v412_v3 = vmul.f32 %v396_v49, %v662_v50  ;;  %v375_v4 = vmul.f32 %v507_v31, %v374_v61  ;;  %v303_v24 = vmul.f32 0.5, %v302_v57 }
 0x13f   :  { %v384_v1 = vsub.f32 1.5, %v383_v42  ;;  %v361_v41 = vmul.f32 %v513_v2, %v832_v38  ;;  %vm367_vm2 = vweird.f32 %v513_v2 }
 0x140   :  { %v409_v25 = vmul.f32 %v393_v0, %v667_v53  ;;  %428 = vst.msk [vmem:[%s892_s2 + $0x30] sm:$0xff] %vm165_vm1, %v412_v3  ;;  %v379_v9 = vsel %vm378_vm12, %v507_v31, %v375_v4  ;;  %v304_v36 = vsub.f32 1.5, %v303_v24  ;;  %vm368_vm4 = vmor %vm366_vm3, %vm367_vm2 }
 0x141   :  { %v385_v6 = vmul.f32 %v509_v44, %v384_v1  ;;  %v404_v50 = vmul.f32 83.864296, %v379_v9  ;;  %v362_v8 = vmul.f32 %v513_v2, %v361_v41 }
 0x142   :  { %425 = vst.msk [vmem:[%s892_s2 + $0x18] sm:$0xff] %vm165_vm1, %v409_v25  ;;  %v305_v11 = vmul.f32 %v511_v54, %v304_v36 }
 0x143   :  { %v389_v53 = vsel %vm388_vm13, %v509_v44, %v385_v6  ;;  %v420_v12 = vmul.f32 %v404_v50, %v664_v51  ;;  %v363_v13 = vmul.f32 0.5, %v362_v8 }
 0x144   :  { %v405_v10 = vmul.f32 83.864296, %v389_v53  ;;  %v309_v32 = vsel %vm308_vm0, %v511_v54, %v305_v11 }
 0x145   :  { %436 = vst.msk [vmem:[%s892_s2 + $0x70] sm:$0xff] %vm165_vm1, %v420_v12  ;;  %v397_v5 = vmul.f32 83.864296, %v309_v32  ;;  %v364_v16 = vsub.f32 1.5, %v363_v13 }
 0x146   :  { %v421_v15 = vmul.f32 %v405_v10, %v683_v63 }
 0x147   :  { %v413_v51 = vmul.f32 %v397_v5, %v681_v62  ;;  %v365_v14 = vmul.f32 %v513_v2, %v364_v16 }
 0x148   :  { %437 = vst.msk [vmem:[%s892_s2 + $0x78] sm:$0xff] %vm165_vm1, %v421_v15 }
 0x149   :  { %429 = vst.msk [vmem:[%s892_s2 + $0x38] sm:$0xff] %vm165_vm1, %v413_v51  ;;  %v369_v63 = vsel %vm368_vm4, %v513_v2, %v365_v14 }
 0x14a   :  { %v403_v17 = vmul.f32 83.864296, %v369_v63 }
 0x14c   :  { %v419_v19 = vmul.f32 %v403_v17, %v651_v43 }
 0x14e   :  { %435 = vst.msk [vmem:[%s892_s2 + $0x68] sm:$0xff] %vm165_vm1, %v419_v19 }

</bundles_post_ra>
